<compile_context>
chip_gen: v7x
topology: tpu7x:2x2x1
jax: 0.10.0
libtpu: 0.0.40
codegen_flags: <defaults>
</compile_context>

<pallas_src>
import jax
import jax.numpy as jnp
from jax.experimental import pallas as pl
from jax.experimental.pallas import tpu as pltpu

_SUBLANE = 8  # f32 sublane tile: batch tiles are multiples of 8 rows.


def _round_up(x, m):
    return ((x + m - 1) // m) * m


def _pick_block_b(batch):
    """Batch row-tile heuristic.

    * B <= 512  -> single grid step (per-step overhead ~0.35 us dominates the
      ~40 MFLOP of work, so fewer steps is strictly better).
    * B  > 512  -> two ~half-batch tiles so dimension_semantics=("parallel",)
      can split them across v7x's two TensorCores; capped at 2048 rows so the
      per-step VMEM footprint (~5 MiB incl. double buffers + the f32 hidden
      activation) fits v5e's 16 MiB default scoped VMEM without raising
      vmem_limit_bytes.
    """
    batch = max(batch, _SUBLANE)
    if batch <= 512:
        return _round_up(batch, _SUBLANE)
    return min(2048, _round_up((batch + 1) // 2, _SUBLANE))


def dqn_mlp_kernel(x_ref, w1_ref, b1_ref, w2_ref, b2_ref, o_ref):
    # Hidden layer: (TB, S) @ (S, H) + (1, H), ReLU.  x is cast to the weight
    # dtype *inside* the kernel (free under the x-tile DMA; f32 path = no-op).
    h = jnp.dot(x_ref[...].astype(w1_ref.dtype), w1_ref[...],
                preferred_element_type=jnp.float32)
    h = jnp.maximum(h + b1_ref[...], 0.0)
    # Output layer: (TB, H) @ (H, A) + (1, A).  A (=3) columns only — no lane
    # padding is materialized in HBM.
    q = jnp.dot(h.astype(w2_ref.dtype), w2_ref[...],
                preferred_element_type=jnp.float32) + b2_ref[...]
    o_ref[...] = q.astype(o_ref.dtype)


def dqn_act_kernel(x_ref, w1_ref, b1_ref, w2_ref, b2_ref, a_ref):
    # Same MLP, epilogue fused with greedy action selection (argmax over A).
    h = jnp.dot(x_ref[...].astype(w1_ref.dtype), w1_ref[...],
                preferred_element_type=jnp.float32)
    h = jnp.maximum(h + b1_ref[...], 0.0)
    q = jnp.dot(h.astype(w2_ref.dtype), w2_ref[...],
                preferred_element_type=jnp.float32) + b2_ref[...]
    # First-occurrence argmax (matches torch.argmax).  w2/b2 are unpadded, so
    # there are no fake zero-Q action columns to mask out.
    q_max = jnp.max(q, axis=-1, keepdims=True)
    lane = jax.lax.broadcasted_iota(jnp.int32, q.shape, 1)
    cand = jnp.where(q == q_max, lane, q.shape[-1])
    a_ref[...] = jnp.min(cand, axis=-1, keepdims=True).astype(a_ref.dtype)


def prepare_params(w1, b1, w2, b2, *, use_bf16=False):
    """One-time parameter prep, hoisted out of the per-step forward.

    Only the (optional) bf16 cast of the weight matrices happens here; there
    is no per-call padding left.  Biases stay f32 (f32 epilogue)."""
    wdt = jnp.bfloat16 if use_bf16 else jnp.float32
    return (w1.astype(wdt), b1.astype(jnp.float32),
            w2.astype(wdt), b2.astype(jnp.float32))


def _run(kernel, x, params, out_cols, out_dtype):
    w1, b1, w2, b2 = params
    B, S = x.shape
    H = w1.shape[1]
    A = w2.shape[1]

    block_b = _pick_block_b(B)
    Bp = _round_up(B, block_b)
    x_p = x if Bp == B else jnp.pad(x, ((0, Bp - B), (0, 0)))
    grid = (Bp // block_b,)

    out_itemsize = jnp.dtype(out_dtype).itemsize
    cost = pl.CostEstimate(
        flops=2 * Bp * H * (S + A),
        transcendentals=0,
        bytes_accessed=int(Bp * S * x.dtype.itemsize)
        + int(w1.nbytes) + int(b1.nbytes) + int(w2.nbytes) + int(b2.nbytes)
        + int(Bp * out_cols * out_itemsize),
    )

    out = pl.pallas_call(
        kernel,
        out_shape=jax.ShapeDtypeStruct((Bp, out_cols), out_dtype),
        grid=grid,
        in_specs=[
            # x is the only streamed operand: one (block_b, S) tile per step.
            pl.BlockSpec((block_b, S), lambda i: (i, 0)),
            # Weights/biases: constant index_map -> fetched once, VMEM-resident
            # across the whole grid (no per-step re-DMA).  ~70 KiB total, so
            # the default double buffer is a negligible cost.
            pl.BlockSpec((S, H), lambda i: (0, 0)),
            pl.BlockSpec((1, H), lambda i: (0, 0)),
            pl.BlockSpec((H, A), lambda i: (0, 0)),
            pl.BlockSpec((1, A), lambda i: (0, 0)),
        ],
        # Unpadded output columns: masked lane stores, but ~42x fewer HBM bytes
        # written than a 128-lane-padded Q block.
        out_specs=pl.BlockSpec((block_b, out_cols), lambda i: (i, 0)),
        compiler_params=pltpu.CompilerParams(
            # Batch tiles are independent -> megacore-shardable on v7x,
            # harmless (single TC) on v5e/v6e.
            dimension_semantics=("parallel",),
        ),
        cost_estimate=cost,
    )(x_p, w1, b1, w2, b2)

    return out[:B]


def dqn_forward(x, params):
    """Fused forward pass of DQNetwork (hidden_layers=[H]).

    x: (B, S) f32; params from prepare_params().  Returns (B, A) f32 Q-values,
    identical semantics to the PyTorch Sequential."""
    A = params[2].shape[1]
    return _run(dqn_mlp_kernel, x, params, out_cols=A, out_dtype=jnp.float32)


def dqn_act(x, params):
    """Greedy-action path: fused MLP + argmax. Returns (B,) int32 actions."""
    out = _run(dqn_act_kernel, x, params, out_cols=1, out_dtype=jnp.int32)
    return out[:, 0]


def init_params(key, state_size, action_size, hidden):
    """Deterministic init mimicking PyTorch nn.Linear default
    (U[-1/sqrt(fan_in), +1/sqrt(fan_in)])."""
    k1, k2, k3, k4 = jax.random.split(key, 4)
    bound1 = 1.0 / jnp.sqrt(jnp.float32(state_size))
    bound2 = 1.0 / jnp.sqrt(jnp.float32(hidden))
    w1 = jax.random.uniform(k1, (state_size, hidden), jnp.float32, -bound1, bound1)
    b1 = jax.random.uniform(k2, (1, hidden), jnp.float32, -bound1, bound1)
    w2 = jax.random.uniform(k3, (hidden, action_size), jnp.float32, -bound2, bound2)
    b2 = jax.random.uniform(k4, (1, action_size), jnp.float32, -bound2, bound2)
    return w1, b1, w2, b2


if __name__ == "__main__":
    key = jax.random.PRNGKey(0)
    batch = 256          # replay-sized batch -> a single grid step now
    state_size = 16
    action_size = 3      # 0=Hold, 1=Buy, 2=Sell
    hidden = 256         # module default hidden_layers=[256]

    kx, kp = jax.random.split(key)
    x = jax.random.normal(kx, (batch, state_size), jnp.float32)
    raw = init_params(kp, state_size, action_size, hidden)

    # Reference in plain JAX (same semantics as the PyTorch Sequential).
    ref = jnp.maximum(x @ raw[0] + raw[1], 0.0) @ raw[2] + raw[3]

    # f32 path (bit-tight vs. the module's f32 semantics).
    params = prepare_params(*raw)
    q = jax.block_until_ready(dqn_forward(x, params))
    assert q.shape == (batch, action_size)
    assert jnp.allclose(q, ref, atol=1e-4, rtol=1e-4)

    # Tiny online-acting batch: fused argmax kernel, no padding to 128 rows
    # and no Q-matrix writeback.
    x_small = x[:8]
    act = jax.block_until_ready(dqn_act(x_small, params))
    assert act.shape == (8,)
    assert jnp.array_equal(act, jnp.argmax(ref[:8], axis=-1).astype(jnp.int32))

    # bf16-weight path: quantization is intentional, so use a loose tolerance
    # (keeps an apparent "kernel bug" from being reported by a tight check).
    params_bf16 = prepare_params(*raw, use_bf16=True)
    q_bf16 = jax.block_until_ready(dqn_forward(x, params_bf16))
    assert jnp.allclose(q_bf16, ref, atol=5e-2, rtol=5e-2)

    print("KERNEL_OK")
</pallas_src>

<mosaic_0001>
module attributes {stable_mosaic.version = 11 : i64} {
  func.func @dqn_mlp_kernel(%arg0: i32, %arg1: memref<256x16xf32, #tpu.memory_space<vmem>>, %arg2: memref<16x256xf32, #tpu.memory_space<vmem>>, %arg3: memref<1x256xf32, #tpu.memory_space<vmem>>, %arg4: memref<256x3xf32, #tpu.memory_space<vmem>>, %arg5: memref<1x3xf32, #tpu.memory_space<vmem>>, %arg6: memref<256x3xf32, #tpu.memory_space<vmem>>) attributes {dimension_semantics = [#tpu.dimension_semantics<parallel>], iteration_bounds = array<i64: 1>, scalar_prefetch = 0 : i64, scratch_operands = 0 : i64, tpu.core_type = #tpu.core_type<tc>, window_params = [{transform_indices = @transform_0, window_bounds = array<i64: 256, 16>}, {pipeline_mode = #tpu.pipeline_mode<synchronous>, transform_indices = @transform_1, window_bounds = array<i64: 16, 256>}, {pipeline_mode = #tpu.pipeline_mode<synchronous>, transform_indices = @transform_2, window_bounds = array<i64: 1, 256>}, {pipeline_mode = #tpu.pipeline_mode<synchronous>, transform_indices = @transform_3, window_bounds = array<i64: 256, 3>}, {pipeline_mode = #tpu.pipeline_mode<synchronous>, transform_indices = @transform_4, window_bounds = array<i64: 1, 3>}, {transform_indices = @transform_5, window_bounds = array<i64: 256, 3>}]} {
    %c0 = arith.constant 0 : index
    %c0_0 = arith.constant 0 : index
    %0 = vector.load %arg1[%c0, %c0_0] : memref<256x16xf32, #tpu.memory_space<vmem>>, vector<256x16xf32>
    %c0_1 = arith.constant 0 : index
    %c0_2 = arith.constant 0 : index
    %1 = vector.load %arg2[%c0_1, %c0_2] : memref<16x256xf32, #tpu.memory_space<vmem>>, vector<16x256xf32>
    %cst = arith.constant dense<0.000000e+00> : vector<256x256xf32>
    %2 = tpu.matmul %0, %1, %cst {dimension_numbers = #tpu.dot_dimension_numbers<[1], [0], [0], [1], [0, 0, 1, 1], [], []>} : vector<256x16xf32>, vector<16x256xf32>, vector<256x256xf32> -> vector<256x256xf32>
    %c0_3 = arith.constant 0 : index
    %c0_4 = arith.constant 0 : index
    %3 = vector.load %arg3[%c0_3, %c0_4] : memref<1x256xf32, #tpu.memory_space<vmem>>, vector<1x256xf32>
    %4 = vector.broadcast %3 : vector<1x256xf32> to vector<256x256xf32>
    %5 = arith.addf %2, %4 : vector<256x256xf32>
    %cst_5 = arith.constant 0.000000e+00 : f32
    %6 = vector.broadcast %cst_5 : f32 to vector<256x256xf32>
    %7 = arith.maximumf %5, %6 : vector<256x256xf32>
    %c0_6 = arith.constant 0 : index
    %c0_7 = arith.constant 0 : index
    %8 = vector.load %arg4[%c0_6, %c0_7] : memref<256x3xf32, #tpu.memory_space<vmem>>, vector<256x3xf32>
    %cst_8 = arith.constant dense<0.000000e+00> : vector<256x3xf32>
    %9 = tpu.matmul %7, %8, %cst_8 {dimension_numbers = #tpu.dot_dimension_numbers<[1], [0], [0], [1], [0, 0, 1, 1], [], []>} : vector<256x256xf32>, vector<256x3xf32>, vector<256x3xf32> -> vector<256x3xf32>
    %c0_9 = arith.constant 0 : index
    %c0_10 = arith.constant 0 : index
    %10 = vector.load %arg5[%c0_9, %c0_10] : memref<1x3xf32, #tpu.memory_space<vmem>>, vector<1x3xf32>
    %11 = vector.broadcast %10 : vector<1x3xf32> to vector<256x3xf32>
    %12 = arith.addf %9, %11 : vector<256x3xf32>
    %c0_11 = arith.constant 0 : index
    %c0_12 = arith.constant 0 : index
    %13 = vector.load %arg6[%c0_11, %c0_12] : memref<256x3xf32, #tpu.memory_space<vmem>>, vector<256x3xf32>
    tpu.vector_store %arg6[%c0_11, %c0_12], %12 {strides = array<i32>} : memref<256x3xf32, #tpu.memory_space<vmem>>, vector<256x3xf32>,
    return
  }
  func.func @transform_0(%arg0: i32) -> (i32, i32) {
    %c0_i32 = arith.constant 0 : i32
    %c0_i32_0 = arith.constant 0 : i32
    return %arg0, %c0_i32 : i32, i32
  }
  func.func @transform_1(%arg0: i32) -> (i32, i32) {
    %c0_i32 = arith.constant 0 : i32
    %c0_i32_0 = arith.constant 0 : i32
    %c0_i32_1 = arith.constant 0 : i32
    return %c0_i32, %c0_i32_0 : i32, i32
  }
  func.func @transform_2(%arg0: i32) -> (i32, i32) {
    %c0_i32 = arith.constant 0 : i32
    %c0_i32_0 = arith.constant 0 : i32
    %c0_i32_1 = arith.constant 0 : i32
    return %c0_i32, %c0_i32_0 : i32, i32
  }
  func.func @transform_3(%arg0: i32) -> (i32, i32) {
    %c0_i32 = arith.constant 0 : i32
    %c0_i32_0 = arith.constant 0 : i32
    %c0_i32_1 = arith.constant 0 : i32
    return %c0_i32, %c0_i32_0 : i32, i32
  }
  func.func @transform_4(%arg0: i32) -> (i32, i32) {
    %c0_i32 = arith.constant 0 : i32
    %c0_i32_0 = arith.constant 0 : i32
    %c0_i32_1 = arith.constant 0 : i32
    return %c0_i32, %c0_i32_0 : i32, i32
  }
  func.func @transform_5(%arg0: i32) -> (i32, i32) {
    %c0_i32 = arith.constant 0 : i32
    %c0_i32_0 = arith.constant 0 : i32
    return %arg0, %c0_i32 : i32, i32
  }
}

</mosaic_0001>

<bundles_post_ra>
// kernel: tpu_custom_call.1
= control target key start
LH: loop header
LB: loop body
LE: loop exit
PB: predicated region body
PF: predicated region fallthrough
CT: control target
= control target key end

     0   :  { %v906_v3 = vmov 0.0   ;;  %vm68_vm0 = vcmask 130048   ;;  %v907_v8 = vmov 0.0|0.0   ;;  %vm750_vm1 = vcmask 23552   ;;  %s1474_s1 = inlined_call_operand.vmem [shape: f32[16,256], index: 1, kind: input, shape index: {}]   ;;  %s1475_s0 = inlined_call_operand.vmem [shape: f32[256,16], index: 0, kind: input, shape index: {}]   ;;  %s1476_s3 = inlined_call_operand.vmem [shape: f32[256,3], index: 3, kind: input, shape index: {}]   ;;  %s1477_s2 = inlined_call_operand.vmem [shape: f32[1,256], index: 2, kind: input, shape index: {}]   ;;  %s1478_s4 = inlined_call_operand.vmem [shape: f32[1,3], index: 4, kind: input, shape index: {}]   ;;  %s1479_s5 = inlined_call_operand.vmem [shape: f32[256,3], index: 5, kind: output, shape index: {}]  }
   0x1   :  { %v53_v0 = vld [vmem:[%s1474_s1 + $0x8] sm:$0xff]  ;;  %v55_v1 = vld [vmem:[%s1474_s1 + $0x18] sm:$0xff]  ;;  %v52_v2 = vld [vmem:[%s1474_s1] sm:$0xff]  ;;  %229 = vmatprep.mubr.f32.mxu0 %v906_v3  ;;  %872 = vmatprep.subr.bf16.mxu1 %v907_v8 }
   0x2   :  { %v820_v4 = vpack.c.bf16 %v55_v1, %v53_v0  ;;  %v54_v5 = vld [vmem:[%s1474_s1 + $0x10] sm:$0xff]  ;;  %v20_v7 = vld [vmem:[%s1475_s0] sm:$0xff]  ;;  %v21_v9 = vld [vmem:[%s1475_s0 + $0x8] sm:$0xff] }
   0x3   :  { %v822_v6 = vpack.c.bf16 %v54_v5, %v52_v2  ;;  %v22_v10 = vld [vmem:[%s1475_s0 + $0x10] sm:$0xff]  ;;  %v486_v11 = vld [vmem:[%s1476_s3] sm:$0xff]  ;;  %v487_v12 = vld [vmem:[%s1476_s3 + $0x8] sm:$0xff] }
   0x4   :  { %821 = vmatprep.subr.bf16.mxu0 %v820_v4  ;;  %v825_v13 = vpack.c.bf16 %v487_v12, %v486_v11  ;;  %v488_v14 = vld [vmem:[%s1476_s3 + $0x10] sm:$0xff]  ;;  %v489_v15 = vld [vmem:[%s1476_s3 + $0x18] sm:$0xff]  ;;  %v490_v18 = vld [vmem:[%s1476_s3 + $0x20] sm:$0xff] }
   0x5   :  { %823 = vmatpush1.bf16.msra.mxu0 %v822_v6  ;;  %v23_v16 = vld [vmem:[%s1475_s0 + $0x18] sm:$0xff]  ;;  %v828_v17 = vpack.c.bf16 %v489_v15, %v488_v14  ;;  %v491_v19 = vld [vmem:[%s1476_s3 + $0x28] sm:$0xff]  ;;  %v24_v20 = vld [vmem:[%s1475_s0 + $0x20] sm:$0xff] }
   0x6   :  { %824 = vmatprep.subr.bf16.mxu0 %v907_v8  ;;  %888 = vmatpush1.bf16.msra.mxu1 %v825_v13  ;;  %v831_v21 = vpack.c.bf16 %v491_v19, %v490_v18  ;;  %v492_v22 = vld [vmem:[%s1476_s3 + $0x30] sm:$0xff]  ;;  %v493_v23 = vld [vmem:[%s1476_s3 + $0x38] sm:$0xff]  ;;  %v25_v24 = vld [vmem:[%s1475_s0 + $0x28] sm:$0xff] }
   0x7   :  { %873 = vmatprep.subr.bf16.mxu1 %v907_v8  ;;  %v834_v25 = vpack.c.bf16 %v493_v23, %v492_v22  ;;  %v494_v26 = vld [vmem:[%s1476_s3 + $0x40] sm:$0xff]  ;;  %v495_v27 = vld [vmem:[%s1476_s3 + $0x48] sm:$0xff]  ;;  %v26_v28 = vld [vmem:[%s1475_s0 + $0x30] sm:$0xff] }
   0x8   :  { %787 = vmatmul.mubr.msk.f32.vlgmr.msra.gmra.mrb[0].mxu0 %vm68_vm0, %v20_v7  ;;  %v837_v29 = vpack.c.bf16 %v495_v27, %v494_v26  ;;  %v496_v30 = vld [vmem:[%s1476_s3 + $0x50] sm:$0xff]  ;;  %v497_v31 = vld [vmem:[%s1476_s3 + $0x58] sm:$0xff]  ;;  %v498_v34 = vld [vmem:[%s1476_s3 + $0x60] sm:$0xff] }
   0x9   :  { %235 = vmatprep.mubr.f32.mxu0 %v906_v3  ;;  %826 = vmatpush1.bf16.msra.mxu0 %v825_v13  ;;  %v27_v32 = vld [vmem:[%s1475_s0 + $0x38] sm:$0xff]  ;;  %v840_v33 = vpack.c.bf16 %v497_v31, %v496_v30  ;;  %v499_v35 = vld [vmem:[%s1476_s3 + $0x68] sm:$0xff]  ;;  %v28_v36 = vld [vmem:[%s1475_s0 + $0x40] sm:$0xff] }
   0xa   :  { %827 = vmatprep.subr.bf16.mxu0 %v907_v8  ;;  %889 = vmatpush1.bf16.msra.mxu1 %v828_v17  ;;  %v843_v37 = vpack.c.bf16 %v499_v35, %v498_v34  ;;  %v500_v38 = vld [vmem:[%s1476_s3 + $0x70] sm:$0xff]  ;;  %v501_v39 = vld [vmem:[%s1476_s3 + $0x78] sm:$0xff]  ;;  %v29_v40 = vld [vmem:[%s1475_s0 + $0x48] sm:$0xff] }
   0xb   :  { %874 = vmatprep.subr.bf16.mxu1 %v907_v8  ;;  %v846_v41 = vpack.c.bf16 %v501_v39, %v500_v38  ;;  %v502_v42 = vld [vmem:[%s1476_s3 + $0x80] sm:$0xff]  ;;  %v503_v43 = vld [vmem:[%s1476_s3 + $0x88] sm:$0xff]  ;;  %v30_v44 = vld [vmem:[%s1475_s0 + $0x50] sm:$0xff] }
   0xc   :  { %788 = vmatmul.mubr.msk.f32.gmra.mrb[2].mxu0 %vm68_vm0, %v21_v9  ;;  %v849_v45 = vpack.c.bf16 %v503_v43, %v502_v42  ;;  %v504_v46 = vld [vmem:[%s1476_s3 + $0x90] sm:$0xff]  ;;  %v505_v47 = vld [vmem:[%s1476_s3 + $0x98] sm:$0xff]  ;;  %v506_v50 = vld [vmem:[%s1476_s3 + $0xa0] sm:$0xff] }
   0xd   :  { %241 = vmatprep.mubr.f32.mxu0 %v906_v3  ;;  %829 = vmatpush1.bf16.msra.mxu0 %v828_v17  ;;  %v31_v48 = vld [vmem:[%s1475_s0 + $0x58] sm:$0xff]  ;;  %v852_v49 = vpack.c.bf16 %v505_v47, %v504_v46  ;;  %v507_v51 = vld [vmem:[%s1476_s3 + $0xa8] sm:$0xff]  ;;  %v32_v52 = vld [vmem:[%s1475_s0 + $0x60] sm:$0xff] }
   0xe   :  { %830 = vmatprep.subr.bf16.mxu0 %v907_v8  ;;  %890 = vmatpush1.bf16.msra.mxu1 %v831_v21  ;;  %v855_v53 = vpack.c.bf16 %v507_v51, %v506_v50  ;;  %v508_v54 = vld [vmem:[%s1476_s3 + $0xb0] sm:$0xff]  ;;  %v509_v55 = vld [vmem:[%s1476_s3 + $0xb8] sm:$0xff]  ;;  %v33_v56 = vld [vmem:[%s1475_s0 + $0x68] sm:$0xff] }
   0xf   :  { %875 = vmatprep.subr.bf16.mxu1 %v907_v8  ;;  %v858_v57 = vpack.c.bf16 %v509_v55, %v508_v54  ;;  %v510_v58 = vld [vmem:[%s1476_s3 + $0xc0] sm:$0xff]  ;;  %v511_v59 = vld [vmem:[%s1476_s3 + $0xc8] sm:$0xff]  ;;  %v34_v60 = vld [vmem:[%s1475_s0 + $0x70] sm:$0xff] }
  0x10   :  { %789 = vmatmul.mubr.msk.f32.gmra.mrb[4].mxu0 %vm68_vm0, %v22_v10  ;;  %v861_v61 = vpack.c.bf16 %v511_v59, %v510_v58  ;;  %v512_v62 = vld [vmem:[%s1476_s3 + $0xd0] sm:$0xff]  ;;  %v513_v63 = vld [vmem:[%s1476_s3 + $0xd8] sm:$0xff]  ;;  %v36_v2 = vld [vmem:[%s1475_s0 + $0x80] sm:$0xff] }
  0x11   :  { %247 = vmatprep.mubr.f32.mxu0 %v906_v3  ;;  %832 = vmatpush1.bf16.msra.mxu0 %v831_v21  ;;  %v35_v0 = vld [vmem:[%s1475_s0 + $0x78] sm:$0xff]  ;;  %v864_v1 = vpack.c.bf16 %v513_v63, %v512_v62  ;;  %v37_v4 = vld [vmem:[%s1475_s0 + $0x88] sm:$0xff]  ;;  %v38_v5 = vld [vmem:[%s1475_s0 + $0x90] sm:$0xff] }
  0x12   :  { %833 = vmatprep.subr.bf16.mxu0 %v907_v8  ;;  %891 = vmatpush1.bf16.msra.mxu1 %v834_v25  ;;  %v39_v6 = vld [vmem:[%s1475_s0 + $0x98] sm:$0xff]  ;;  %v40_v7 = vld [vmem:[%s1475_s0 + $0xa0] sm:$0xff]  ;;  %v515_v10 = vld [vmem:[%s1476_s3 + $0xe8] sm:$0xff] }
  0x13   :  { %876 = vmatprep.subr.bf16.mxu1 %v907_v8  ;;  %v514_v9 = vld [vmem:[%s1476_s3 + $0xe0] sm:$0xff]  ;;  %v41_v11 = vld [vmem:[%s1475_s0 + $0xa8] sm:$0xff]  ;;  %v516_v13 = vld [vmem:[%s1476_s3 + $0xf0] sm:$0xff] }
  0x14   :  { %790 = vmatmul.mubr.msk.f32.gmra.mrb[6].mxu0 %vm68_vm0, %v23_v16  ;;  %v867_v12 = vpack.c.bf16 %v515_v10, %v514_v9  ;;  %v517_v14 = vld [vmem:[%s1476_s3 + $0xf8] sm:$0xff]  ;;  %v42_v15 = vld [vmem:[%s1475_s0 + $0xb0] sm:$0xff]  ;;  %v44_v18 = vld [vmem:[%s1475_s0 + $0xc0] sm:$0xff] }
  0x15   :  { %253 = vmatprep.mubr.f32.mxu0 %v906_v3  ;;  %835 = vmatpush1.bf16.msra.mxu0 %v834_v25  ;;  %v870_v16 = vpack.c.bf16 %v517_v14, %v516_v13  ;;  %v43_v17 = vld [vmem:[%s1475_s0 + $0xb8] sm:$0xff]  ;;  %v46_v19 = vld [vmem:[%s1475_s0 + $0xd0] sm:$0xff]  ;;  %v48_v21 = vld [vmem:[%s1475_s0 + $0xe0] sm:$0xff]  ;;  %v58_v25 = vlaneseq }
  0x16   :  { %836 = vmatprep.subr.bf16.mxu0 %v907_v8  ;;  %892 = vmatpush1.bf16.msra.mxu1 %v837_v29  ;;  %v49_v22 = vld [vmem:[%s1475_s0 + $0xe8] sm:$0xff]  ;;  %v50_v23 = vld [vmem:[%s1475_s0 + $0xf0] sm:$0xff] }
  0x17   :  { %877 = vmatprep.subr.bf16.mxu1 %v907_v8  ;;  %v59_v26 = vshrl.u32 %v58_v25, 7 }
  0x18   :  { %791 = vmatmul.mubr.msk.f32.gmra.mrb[8].mxu0 %vm68_vm0, %v24_v20  ;;  %v47_v20 = vld [vmem:[%s1475_s0 + $0xd8] sm:$0xff] }
  0x19   :  { %259 = vmatprep.mubr.f32.mxu0 %v906_v3  ;;  %838 = vmatpush1.bf16.msra.mxu0 %v837_v29  ;;  %v60_v27 = vsub.s32 0, %v59_v26  ;;  %v64_v29 = vsub.s32 1, %v59_v26 }
  0x1a   :  { %839 = vmatprep.subr.bf16.mxu0 %v907_v8  ;;  %893 = vmatpush1.bf16.msra.mxu1 %v840_v33 }
  0x1b   :  { %878 = vmatprep.subr.bf16.mxu1 %v907_v8 }
  0x1c   :  { %792 = vmatmul.mubr.msk.f32.gmra.mrb[10].mxu0 %vm68_vm0, %v25_v24  ;;  %v51_v24 = vld [vmem:[%s1475_s0 + $0xf8] sm:$0xff] }
  0x1d   :  { %265 = vmatprep.mubr.f32.mxu0 %v906_v3  ;;  %841 = vmatpush1.bf16.msra.mxu0 %v840_v33 }
  0x1e   :  { %842 = vmatprep.subr.bf16.mxu0 %v907_v8  ;;  %894 = vmatpush1.bf16.msra.mxu1 %v843_v37 }
  0x1f   :  { %879 = vmatprep.subr.bf16.mxu1 %v907_v8 }
  0x20   :  { %793 = vmatmul.mubr.msk.f32.gmra.mrb[12].mxu0 %vm68_vm0, %v26_v28  ;;  %v56_v28 = vld [vmem:[%s1477_s2] sm:$0x3] }
  0x21   :  { %271 = vmatprep.mubr.f32.mxu0 %v906_v3  ;;  %844 = vmatpush1.bf16.msra.mxu0 %v843_v37  ;;  %v1241_v30 = vrot.slane %v56_v28, %v60_v27  ;;  %v1243_v31 = vrot.slane %v56_v28, %v64_v29 }
  0x22   :  { %845 = vmatprep.subr.bf16.mxu0 %v907_v8  ;;  %895 = vmatpush1.bf16.msra.mxu1 %v846_v41 }
  0x23   :  { %880 = vmatprep.subr.bf16.mxu1 %v907_v8 }
  0x24   :  { %794 = vmatmul.mubr.msk.f32.gmra.mrb[14].mxu0 %vm68_vm0, %v27_v32 }
  0x25   :  { %277 = vmatprep.mubr.f32.mxu0 %v906_v3  ;;  %847 = vmatpush1.bf16.msra.mxu0 %v846_v41 }
  0x26   :  { %848 = vmatprep.subr.bf16.mxu0 %v907_v8  ;;  %896 = vmatpush1.bf16.msra.mxu1 %v849_v45 }
  0x27   :  { %881 = vmatprep.subr.bf16.mxu1 %v907_v8 }
  0x28   :  { %795 = vmatmul.mubr.msk.f32.gmra.mrb[16].mxu0 %vm68_vm0, %v28_v36 }
  0x29   :  { %283 = vmatprep.mubr.f32.mxu0 %v906_v3  ;;  %850 = vmatpush1.bf16.msra.mxu0 %v849_v45 }
  0x2a   :  { %851 = vmatprep.subr.bf16.mxu0 %v907_v8  ;;  %897 = vmatpush1.bf16.msra.mxu1 %v852_v49 }
  0x2b   :  { %882 = vmatprep.subr.bf16.mxu1 %v907_v8 }
  0x2c   :  { %796 = vmatmul.mubr.msk.f32.gmra.mrb[18].mxu0 %vm68_vm0, %v29_v40 }
  0x2d   :  { %289 = vmatprep.mubr.f32.mxu0 %v906_v3  ;;  %853 = vmatpush1.bf16.msra.mxu0 %v852_v49 }
  0x2e   :  { %854 = vmatprep.subr.bf16.mxu0 %v907_v8  ;;  %898 = vmatpush1.bf16.msra.mxu1 %v855_v53 }
  0x2f   :  { %883 = vmatprep.subr.bf16.mxu1 %v907_v8 }
  0x30   :  { %797 = vmatmul.mubr.msk.f32.gmra.mrb[20].mxu0 %vm68_vm0, %v30_v44 }
  0x31   :  { %295 = vmatprep.mubr.f32.mxu0 %v906_v3  ;;  %856 = vmatpush1.bf16.msra.mxu0 %v855_v53 }
  0x32   :  { %857 = vmatprep.subr.bf16.mxu0 %v907_v8  ;;  %899 = vmatpush1.bf16.msra.mxu1 %v858_v57 }
  0x33   :  { %884 = vmatprep.subr.bf16.mxu1 %v907_v8 }
  0x34   :  { %798 = vmatmul.mubr.msk.f32.gmra.mrb[22].mxu0 %vm68_vm0, %v31_v48 }
  0x35   :  { %301 = vmatprep.mubr.f32.mxu0 %v906_v3  ;;  %859 = vmatpush1.bf16.msra.mxu0 %v858_v57 }
  0x36   :  { %860 = vmatprep.subr.bf16.mxu0 %v907_v8  ;;  %900 = vmatpush1.bf16.msra.mxu1 %v861_v61 }
  0x37   :  { %885 = vmatprep.subr.bf16.mxu1 %v907_v8 }
  0x38   :  { %799 = vmatmul.mubr.msk.f32.gmra.mrb[24].mxu0 %vm68_vm0, %v32_v52 }
  0x39   :  { %307 = vmatprep.mubr.f32.mxu0 %v906_v3  ;;  %862 = vmatpush1.bf16.msra.mxu0 %v861_v61 }
  0x3a   :  { %863 = vmatprep.subr.bf16.mxu0 %v907_v8  ;;  %901 = vmatpush1.bf16.msra.mxu1 %v864_v1 }
  0x3b   :  { %886 = vmatprep.subr.bf16.mxu1 %v907_v8 }
  0x3c   :  { %800 = vmatmul.mubr.msk.f32.gmra.mrb[26].mxu0 %vm68_vm0, %v33_v56 }
  0x3d   :  { %313 = vmatprep.mubr.f32.mxu0 %v906_v3  ;;  %865 = vmatpush1.bf16.msra.mxu0 %v864_v1 }
  0x3e   :  { %866 = vmatprep.subr.bf16.mxu0 %v907_v8  ;;  %902 = vmatpush1.bf16.msra.mxu1 %v867_v12 }
  0x3f   :  { %887 = vmatprep.subr.bf16.mxu1 %v907_v8 }
  0x40   :  { %801 = vmatmul.mubr.msk.f32.gmra.mrb[28].mxu0 %vm68_vm0, %v34_v60 }
  0x41   :  { %319 = vmatprep.mubr.f32.mxu0 %v906_v3  ;;  %868 = vmatpush1.bf16.msra.mxu0 %v867_v12 }
  0x42   :  { %869 = vmatprep.subr.bf16.mxu0 %v907_v8  ;;  %903 = vmatpush1.bf16.msra.mxu1 %v870_v16  ;;  %v45_v8 = vld [vmem:[%s1475_s0 + $0xc8] sm:$0xff] }
  0x44   :  { %802 = vmatmul.mubr.msk.f32.gmra.mrb[30].mxu0 %vm68_vm0, %v35_v0 }
  0x45   :  { %325 = vmatprep.mubr.f32.mxu0 %v906_v3  ;;  %871 = vmatpush1.bf16.msra.mxu0 %v870_v16 }
  0x48   :  { %803 = vmatmul.mubr.msk.f32.gmra.mrb[32].mxu0 %vm68_vm0, %v36_v2 }
  0x49   :  { %331 = vmatprep.mubr.f32.mxu0 %v906_v3 }
  0x4c   :  { %804 = vmatmul.mubr.msk.f32.gmra.mrb[34].mxu0 %vm68_vm0, %v37_v4 }
  0x4d   :  { %337 = vmatprep.mubr.f32.mxu0 %v906_v3 }
  0x50   :  { %805 = vmatmul.mubr.msk.f32.gmra.mrb[36].mxu0 %vm68_vm0, %v38_v5 }
  0x51   :  { %343 = vmatprep.mubr.f32.mxu0 %v906_v3 }
  0x54   :  { %806 = vmatmul.mubr.msk.f32.gmra.mrb[38].mxu0 %vm68_vm0, %v39_v6 }
  0x55   :  { %349 = vmatprep.mubr.f32.mxu0 %v906_v3 }
  0x58   :  { %807 = vmatmul.mubr.msk.f32.gmra.mrb[40].mxu0 %vm68_vm0, %v40_v7 }
  0x59   :  { %355 = vmatprep.mubr.f32.mxu0 %v906_v3 }
  0x5c   :  { %808 = vmatmul.mubr.msk.f32.gmra.mrb[42].mxu0 %vm68_vm0, %v41_v11 }
  0x5d   :  { %361 = vmatprep.mubr.f32.mxu0 %v906_v3 }
  0x60   :  { %809 = vmatmul.mubr.msk.f32.gmra.mrb[44].mxu0 %vm68_vm0, %v42_v15 }
  0x61   :  { %367 = vmatprep.mubr.f32.mxu0 %v906_v3 }
  0x64   :  { %810 = vmatmul.mubr.msk.f32.gmra.mrb[46].mxu0 %vm68_vm0, %v43_v17 }
  0x65   :  { %373 = vmatprep.mubr.f32.mxu0 %v906_v3 }
  0x68   :  { %811 = vmatmul.mubr.msk.f32.gmra.mrb[48].mxu0 %vm68_vm0, %v44_v18 }
  0x69   :  { %379 = vmatprep.mubr.f32.mxu0 %v906_v3 }
  0x6c   :  { %812 = vmatmul.mubr.msk.f32.gmra.mrb[50].mxu0 %vm68_vm0, %v45_v8 }
  0x6d   :  { %385 = vmatprep.mubr.f32.mxu0 %v906_v3 }
  0x70   :  { %813 = vmatmul.mubr.msk.f32.gmra.mrb[52].mxu0 %vm68_vm0, %v46_v19 }
  0x71   :  { %391 = vmatprep.mubr.f32.mxu0 %v906_v3 }
  0x74   :  { %814 = vmatmul.mubr.msk.f32.gmra.mrb[54].mxu0 %vm68_vm0, %v47_v20 }
  0x75   :  { %397 = vmatprep.mubr.f32.mxu0 %v906_v3 }
  0x78   :  { %815 = vmatmul.mubr.msk.f32.gmra.mrb[56].mxu0 %vm68_vm0, %v48_v21 }
  0x79   :  { %403 = vmatprep.mubr.f32.mxu0 %v906_v3 }
  0x7c   :  { %816 = vmatmul.mubr.msk.f32.gmra.mrb[58].mxu0 %vm68_vm0, %v49_v22 }
  0x7d   :  { %409 = vmatprep.mubr.f32.mxu0 %v906_v3 }
  0x80   :  { %817 = vmatmul.mubr.msk.f32.gmra.mrb[60].mxu0 %vm68_vm0, %v50_v23 }
  0x81   :  { %415 = vmatprep.mubr.f32.mxu0 %v906_v3 }
  0x84   :  { %818 = vmatmul.mubr.msk.f32.gmra.mrb[62].mxu0 %vm68_vm0, %v51_v24 }
  0xdb   :  { %v231_v32 = vpop.f32.mrb[0].mxu0 }
  0xdc   :  { %v232_v3 = vadd.f32 %v231_v32, %v1241_v30  ;;  %v233_v33 = vpop.f32.mrb[1].mxu0 }
  0xdd   :  { %v234_v34 = vadd.f32 %v233_v33, %v1243_v31 }
  0xde   :  { %v422_v37 = vmax.f32 %v232_v3, 0.0 }
  0xdf   :  { %v423_v35 = vmax.f32 %v234_v34, 0.0  ;;  %v237_v36 = vpop.f32.mrb[2].mxu0 }
  0xe0   :  { %v238_v38 = vadd.f32 %v237_v36, %v1241_v30  ;;  %v239_v39 = vpop.f32.mrb[3].mxu0 }
  0xe1   :  { %v240_v40 = vadd.f32 %v239_v39, %v1243_v31  ;;  %589 = vmatprep.mubr.f32.mxu0 %v423_v35 }
  0xe2   :  { %590 = vmatmul.mubr.f32.vlgmr.msra.gmra.mrb[64].mxu0 %v422_v37  ;;  %v424_v43 = vmax.f32 %v238_v38, 0.0 }
  0xe3   :  { %v425_v41 = vmax.f32 %v240_v40, 0.0  ;;  %v243_v42 = vpop.f32.mrb[4].mxu0 }
  0xe4   :  { %v244_v44 = vadd.f32 %v243_v42, %v1241_v30  ;;  %v245_v45 = vpop.f32.mrb[5].mxu0 }
  0xe5   :  { %v246_v46 = vadd.f32 %v245_v45, %v1243_v31  ;;  %594 = vmatprep.mubr.f32.mxu0 %v425_v41 }
  0xe6   :  { %595 = vmatmul.mubr.f32.gmra.mrb[66].mxu0 %v424_v43  ;;  %v426_v49 = vmax.f32 %v244_v44, 0.0 }
  0xe7   :  { %v427_v47 = vmax.f32 %v246_v46, 0.0  ;;  %v249_v48 = vpop.f32.mrb[6].mxu0 }
  0xe8   :  { %v250_v50 = vadd.f32 %v249_v48, %v1241_v30  ;;  %v251_v51 = vpop.f32.mrb[7].mxu0 }
  0xe9   :  { %v252_v52 = vadd.f32 %v251_v51, %v1243_v31  ;;  %599 = vmatprep.mubr.f32.mxu0 %v427_v47 }
  0xea   :  { %600 = vmatmul.mubr.f32.gmra.mrb[68].mxu0 %v426_v49  ;;  %v428_v55 = vmax.f32 %v250_v50, 0.0 }
  0xeb   :  { %v429_v53 = vmax.f32 %v252_v52, 0.0  ;;  %v255_v54 = vpop.f32.mrb[8].mxu0 }
  0xec   :  { %v256_v56 = vadd.f32 %v255_v54, %v1241_v30  ;;  %v257_v57 = vpop.f32.mrb[9].mxu0 }
  0xed   :  { %v258_v58 = vadd.f32 %v257_v57, %v1243_v31  ;;  %604 = vmatprep.mubr.f32.mxu0 %v429_v53 }
  0xee   :  { %605 = vmatmul.mubr.f32.gmra.mrb[70].mxu0 %v428_v55  ;;  %v430_v61 = vmax.f32 %v256_v56, 0.0 }
  0xef   :  { %v431_v59 = vmax.f32 %v258_v58, 0.0  ;;  %v261_v60 = vpop.f32.mrb[10].mxu0 }
  0xf0   :  { %v262_v62 = vadd.f32 %v261_v60, %v1241_v30  ;;  %v263_v63 = vpop.f32.mrb[11].mxu0 }
  0xf1   :  { %v264_v0 = vadd.f32 %v263_v63, %v1243_v31  ;;  %609 = vmatprep.mubr.f32.mxu0 %v431_v59 }
  0xf2   :  { %610 = vmatmul.mubr.f32.gmra.mrb[72].mxu0 %v430_v61  ;;  %v432_v4 = vmax.f32 %v262_v62, 0.0 }
  0xf3   :  { %v433_v1 = vmax.f32 %v264_v0, 0.0  ;;  %v267_v2 = vpop.f32.mrb[12].mxu0 }
  0xf4   :  { %v268_v5 = vadd.f32 %v267_v2, %v1241_v30  ;;  %v269_v6 = vpop.f32.mrb[13].mxu0 }
  0xf5   :  { %v270_v7 = vadd.f32 %v269_v6, %v1243_v31  ;;  %614 = vmatprep.mubr.f32.mxu0 %v433_v1 }
  0xf6   :  { %615 = vmatmul.mubr.f32.gmra.mrb[74].mxu0 %v432_v4  ;;  %v434_v11 = vmax.f32 %v268_v5, 0.0 }
  0xf7   :  { %v435_v9 = vmax.f32 %v270_v7, 0.0  ;;  %v273_v10 = vpop.f32.mrb[14].mxu0 }
  0xf8   :  { %v274_v12 = vadd.f32 %v273_v10, %v1241_v30  ;;  %v275_v13 = vpop.f32.mrb[15].mxu0 }
  0xf9   :  { %619 = vmatprep.mubr.f32.mxu0 %v435_v9  ;;  %v276_v14 = vadd.f32 %v275_v13, %v1243_v31 }
  0xfa   :  { %620 = vmatmul.mubr.f32.gmra.mrb[76].mxu0 %v434_v11  ;;  %v436_v17 = vmax.f32 %v274_v12, 0.0 }
  0xfb   :  { %v279_v15 = vpop.f32.mrb[16].mxu0  ;;  %v437_v16 = vmax.f32 %v276_v14, 0.0 }
  0xfc   :  { %v280_v18 = vadd.f32 %v279_v15, %v1241_v30  ;;  %v281_v8 = vpop.f32.mrb[17].mxu0 }
  0xfd   :  { %v282_v19 = vadd.f32 %v281_v8, %v1243_v31  ;;  %624 = vmatprep.mubr.f32.mxu1 %v437_v16 }
  0xfe   :  { %625 = vmatmul.mubr.f32.vlgmr.msra.gmra.mrb[0].mxu1 %v436_v17  ;;  %v438_v22 = vmax.f32 %v280_v18, 0.0 }
  0xff   :  { %v439_v20 = vmax.f32 %v282_v19, 0.0  ;;  %v285_v21 = vpop.f32.mrb[18].mxu0 }
 0x100   :  { %v286_v23 = vadd.f32 %v285_v21, %v1241_v30  ;;  %v287_v24 = vpop.f32.mrb[19].mxu0 }
 0x101   :  { %v288_v25 = vadd.f32 %v287_v24, %v1243_v31  ;;  %629 = vmatprep.mubr.f32.mxu1 %v439_v20 }
 0x102   :  { %630 = vmatmul.mubr.f32.gmra.mrb[2].mxu1 %v438_v22  ;;  %v440_v28 = vmax.f32 %v286_v23, 0.0 }
 0x103   :  { %v441_v26 = vmax.f32 %v288_v25, 0.0  ;;  %v291_v27 = vpop.f32.mrb[20].mxu0 }
 0x104   :  { %v292_v29 = vadd.f32 %v291_v27, %v1241_v30  ;;  %v293_v32 = vpop.f32.mrb[21].mxu0 }
 0x105   :  { %v294_v3 = vadd.f32 %v293_v32, %v1243_v31  ;;  %634 = vmatprep.mubr.f32.mxu1 %v441_v26 }
 0x106   :  { %635 = vmatmul.mubr.f32.gmra.mrb[4].mxu1 %v440_v28  ;;  %v442_v35 = vmax.f32 %v292_v29, 0.0 }
 0x107   :  { %v443_v33 = vmax.f32 %v294_v3, 0.0  ;;  %v297_v34 = vpop.f32.mrb[22].mxu0 }
 0x108   :  { %v298_v36 = vadd.f32 %v297_v34, %v1241_v30  ;;  %v299_v37 = vpop.f32.mrb[23].mxu0 }
 0x109   :  { %v300_v38 = vadd.f32 %v299_v37, %v1243_v31  ;;  %639 = vmatprep.mubr.f32.mxu1 %v443_v33 }
 0x10a   :  { %640 = vmatmul.mubr.f32.gmra.mrb[6].mxu1 %v442_v35  ;;  %v444_v41 = vmax.f32 %v298_v36, 0.0 }
 0x10b   :  { %v445_v39 = vmax.f32 %v300_v38, 0.0  ;;  %v303_v40 = vpop.f32.mrb[24].mxu0 }
 0x10c   :  { %v304_v42 = vadd.f32 %v303_v40, %v1241_v30  ;;  %v305_v43 = vpop.f32.mrb[25].mxu0 }
 0x10d   :  { %v306_v44 = vadd.f32 %v305_v43, %v1243_v31  ;;  %644 = vmatprep.mubr.f32.mxu1 %v445_v39 }
 0x10e   :  { %645 = vmatmul.mubr.f32.gmra.mrb[8].mxu1 %v444_v41  ;;  %v446_v47 = vmax.f32 %v304_v42, 0.0 }
 0x10f   :  { %v447_v45 = vmax.f32 %v306_v44, 0.0  ;;  %v309_v46 = vpop.f32.mrb[26].mxu0 }
 0x110   :  { %v310_v48 = vadd.f32 %v309_v46, %v1241_v30  ;;  %v311_v49 = vpop.f32.mrb[27].mxu0 }
 0x111   :  { %v312_v50 = vadd.f32 %v311_v49, %v1243_v31  ;;  %649 = vmatprep.mubr.f32.mxu1 %v447_v45 }
 0x112   :  { %650 = vmatmul.mubr.f32.gmra.mrb[10].mxu1 %v446_v47  ;;  %v448_v53 = vmax.f32 %v310_v48, 0.0 }
 0x113   :  { %v449_v51 = vmax.f32 %v312_v50, 0.0  ;;  %v315_v52 = vpop.f32.mrb[28].mxu0 }
 0x114   :  { %v316_v54 = vadd.f32 %v315_v52, %v1241_v30  ;;  %v317_v55 = vpop.f32.mrb[29].mxu0 }
 0x115   :  { %v318_v56 = vadd.f32 %v317_v55, %v1243_v31  ;;  %654 = vmatprep.mubr.f32.mxu1 %v449_v51 }
 0x116   :  { %655 = vmatmul.mubr.f32.gmra.mrb[12].mxu1 %v448_v53  ;;  %v450_v59 = vmax.f32 %v316_v54, 0.0 }
 0x117   :  { %v451_v57 = vmax.f32 %v318_v56, 0.0  ;;  %v321_v58 = vpop.f32.mrb[30].mxu0 }
 0x118   :  { %v322_v60 = vadd.f32 %v321_v58, %v1241_v30  ;;  %v323_v61 = vpop.f32.mrb[31].mxu0 }
 0x119   :  { %v324_v62 = vadd.f32 %v323_v61, %v1243_v31  ;;  %659 = vmatprep.mubr.f32.mxu1 %v451_v57 }
 0x11a   :  { %660 = vmatmul.mubr.f32.gmra.mrb[14].mxu1 %v450_v59  ;;  %v452_v1 = vmax.f32 %v322_v60, 0.0 }
 0x11b   :  { %v453_v63 = vmax.f32 %v324_v62, 0.0  ;;  %v327_v0 = vpop.f32.mrb[32].mxu0 }
 0x11c   :  { %v328_v2 = vadd.f32 %v327_v0, %v1241_v30  ;;  %v329_v4 = vpop.f32.mrb[33].mxu0 }
 0x11d   :  { %v330_v5 = vadd.f32 %v329_v4, %v1243_v31  ;;  %664 = vmatprep.mubr.f32.mxu1 %v453_v63 }
 0x11e   :  { %665 = vmatmul.mubr.f32.gmra.mrb[16].mxu1 %v452_v1  ;;  %v454_v9 = vmax.f32 %v328_v2, 0.0 }
 0x11f   :  { %v455_v6 = vmax.f32 %v330_v5, 0.0  ;;  %v333_v7 = vpop.f32.mrb[34].mxu0 }
 0x120   :  { %v334_v10 = vadd.f32 %v333_v7, %v1241_v30  ;;  %v335_v11 = vpop.f32.mrb[35].mxu0 }
 0x121   :  { %v336_v12 = vadd.f32 %v335_v11, %v1243_v31  ;;  %669 = vmatprep.mubr.f32.mxu1 %v455_v6 }
 0x122   :  { %670 = vmatmul.mubr.f32.gmra.mrb[18].mxu1 %v454_v9  ;;  %v456_v15 = vmax.f32 %v334_v10, 0.0 }
 0x123   :  { %v457_v13 = vmax.f32 %v336_v12, 0.0  ;;  %v339_v14 = vpop.f32.mrb[36].mxu0 }
 0x124   :  { %v340_v16 = vadd.f32 %v339_v14, %v1241_v30  ;;  %v341_v17 = vpop.f32.mrb[37].mxu0 }
 0x125   :  { %v342_v18 = vadd.f32 %v341_v17, %v1243_v31  ;;  %674 = vmatprep.mubr.f32.mxu1 %v457_v13 }
 0x126   :  { %675 = vmatmul.mubr.f32.gmra.mrb[20].mxu1 %v456_v15  ;;  %v458_v20 = vmax.f32 %v340_v16, 0.0 }
 0x127   :  { %v459_v8 = vmax.f32 %v342_v18, 0.0  ;;  %v345_v19 = vpop.f32.mrb[38].mxu0 }
 0x128   :  { %v346_v21 = vadd.f32 %v345_v19, %v1241_v30  ;;  %v347_v22 = vpop.f32.mrb[39].mxu0 }
 0x129   :  { %v348_v23 = vadd.f32 %v347_v22, %v1243_v31  ;;  %679 = vmatprep.mubr.f32.mxu1 %v459_v8 }
 0x12a   :  { %680 = vmatmul.mubr.f32.gmra.mrb[22].mxu1 %v458_v20  ;;  %v460_v26 = vmax.f32 %v346_v21, 0.0 }
 0x12b   :  { %v461_v24 = vmax.f32 %v348_v23, 0.0  ;;  %v351_v25 = vpop.f32.mrb[40].mxu0 }
 0x12c   :  { %v352_v27 = vadd.f32 %v351_v25, %v1241_v30  ;;  %v353_v28 = vpop.f32.mrb[41].mxu0 }
 0x12d   :  { %v354_v29 = vadd.f32 %v353_v28, %v1243_v31  ;;  %684 = vmatprep.mubr.f32.mxu1 %v461_v24 }
 0x12e   :  { %685 = vmatmul.mubr.f32.gmra.mrb[24].mxu1 %v460_v26  ;;  %v462_v33 = vmax.f32 %v352_v27, 0.0 }
 0x12f   :  { %v463_v32 = vmax.f32 %v354_v29, 0.0  ;;  %v357_v3 = vpop.f32.mrb[42].mxu0 }
 0x130   :  { %v358_v34 = vadd.f32 %v357_v3, %v1241_v30  ;;  %v359_v35 = vpop.f32.mrb[43].mxu0 }
 0x131   :  { %v360_v36 = vadd.f32 %v359_v35, %v1243_v31  ;;  %689 = vmatprep.mubr.f32.mxu1 %v463_v32 }
 0x132   :  { %690 = vmatmul.mubr.f32.gmra.mrb[26].mxu1 %v462_v33  ;;  %v464_v39 = vmax.f32 %v358_v34, 0.0 }
 0x133   :  { %v465_v37 = vmax.f32 %v360_v36, 0.0  ;;  %v363_v38 = vpop.f32.mrb[44].mxu0 }
 0x134   :  { %v364_v40 = vadd.f32 %v363_v38, %v1241_v30  ;;  %v365_v41 = vpop.f32.mrb[45].mxu0 }
 0x135   :  { %v366_v42 = vadd.f32 %v365_v41, %v1243_v31  ;;  %694 = vmatprep.mubr.f32.mxu1 %v465_v37  ;;  %v1312_v37 = vld [vmem:[%s1478_s4] ss:$0 sm:$0xff] }
 0x136   :  { %695 = vmatmul.mubr.f32.gmra.mrb[28].mxu1 %v464_v39  ;;  %v466_v45 = vmax.f32 %v364_v40, 0.0 }
 0x137   :  { %v467_v43 = vmax.f32 %v366_v42, 0.0  ;;  %v369_v44 = vpop.f32.mrb[46].mxu0 }
 0x138   :  { %v370_v46 = vadd.f32 %v369_v44, %v1241_v30  ;;  %v371_v47 = vpop.f32.mrb[47].mxu0 }
 0x139   :  { %v372_v48 = vadd.f32 %v371_v47, %v1243_v31  ;;  %699 = vmatprep.mubr.f32.mxu1 %v467_v43 }
 0x13a   :  { %700 = vmatmul.mubr.f32.gmra.mrb[30].mxu1 %v466_v45  ;;  %v468_v51 = vmax.f32 %v370_v46, 0.0 }
 0x13b   :  { %v469_v49 = vmax.f32 %v372_v48, 0.0  ;;  %v375_v50 = vpop.f32.mrb[48].mxu0 }
 0x13c   :  { %v376_v52 = vadd.f32 %v375_v50, %v1241_v30  ;;  %v377_v53 = vpop.f32.mrb[49].mxu0 }
 0x13d   :  { %v378_v54 = vadd.f32 %v377_v53, %v1243_v31  ;;  %704 = vmatprep.mubr.f32.mxu1 %v469_v49 }
 0x13e   :  { %705 = vmatmul.mubr.f32.gmra.mrb[32].mxu1 %v468_v51  ;;  %v470_v57 = vmax.f32 %v376_v52, 0.0 }
 0x13f   :  { %v471_v55 = vmax.f32 %v378_v54, 0.0  ;;  %v381_v56 = vpop.f32.mrb[50].mxu0 }
 0x140   :  { %v382_v58 = vadd.f32 %v381_v56, %v1241_v30  ;;  %v383_v59 = vpop.f32.mrb[51].mxu0 }
 0x141   :  { %v384_v60 = vadd.f32 %v383_v59, %v1243_v31  ;;  %709 = vmatprep.mubr.f32.mxu1 %v471_v55 }
 0x142   :  { %710 = vmatmul.mubr.f32.gmra.mrb[34].mxu1 %v470_v57  ;;  %v472_v63 = vmax.f32 %v382_v58, 0.0 }
 0x143   :  { %v473_v61 = vmax.f32 %v384_v60, 0.0  ;;  %v387_v62 = vpop.f32.mrb[52].mxu0 }
 0x144   :  { %v388_v0 = vadd.f32 %v387_v62, %v1241_v30  ;;  %v389_v1 = vpop.f32.mrb[53].mxu0 }
 0x145   :  { %v390_v2 = vadd.f32 %v389_v1, %v1243_v31  ;;  %714 = vmatprep.mubr.f32.mxu1 %v473_v61 }
 0x146   :  { %715 = vmatmul.mubr.f32.gmra.mrb[36].mxu1 %v472_v63  ;;  %v474_v6 = vmax.f32 %v388_v0, 0.0 }
 0x147   :  { %v475_v4 = vmax.f32 %v390_v2, 0.0  ;;  %v393_v5 = vpop.f32.mrb[54].mxu0 }
 0x148   :  { %v394_v7 = vadd.f32 %v393_v5, %v1241_v30  ;;  %v395_v9 = vpop.f32.mrb[55].mxu0 }
 0x149   :  { %v396_v10 = vadd.f32 %v395_v9, %v1243_v31  ;;  %719 = vmatprep.mubr.f32.mxu1 %v475_v4 }
 0x14a   :  { %720 = vmatmul.mubr.f32.gmra.mrb[38].mxu1 %v474_v6  ;;  %v476_v13 = vmax.f32 %v394_v7, 0.0 }
 0x14b   :  { %v477_v11 = vmax.f32 %v396_v10, 0.0  ;;  %v399_v12 = vpop.f32.mrb[56].mxu0 }
 0x14c   :  { %v400_v14 = vadd.f32 %v399_v12, %v1241_v30  ;;  %v401_v15 = vpop.f32.mrb[57].mxu0 }
 0x14d   :  { %v402_v16 = vadd.f32 %v401_v15, %v1243_v31  ;;  %724 = vmatprep.mubr.f32.mxu1 %v477_v11 }
 0x14e   :  { %725 = vmatmul.mubr.f32.gmra.mrb[40].mxu1 %v476_v13  ;;  %v478_v8 = vmax.f32 %v400_v14, 0.0 }
 0x14f   :  { %v479_v17 = vmax.f32 %v402_v16, 0.0  ;;  %v405_v18 = vpop.f32.mrb[58].mxu0 }
 0x150   :  { %v406_v19 = vadd.f32 %v405_v18, %v1241_v30  ;;  %v407_v20 = vpop.f32.mrb[59].mxu0 }
 0x151   :  { %v408_v21 = vadd.f32 %v407_v20, %v1243_v31  ;;  %729 = vmatprep.mubr.f32.mxu1 %v479_v17 }
 0x152   :  { %730 = vmatmul.mubr.f32.gmra.mrb[42].mxu1 %v478_v8  ;;  %v480_v24 = vmax.f32 %v406_v19, 0.0 }
 0x153   :  { %v481_v22 = vmax.f32 %v408_v21, 0.0  ;;  %v411_v23 = vpop.f32.mrb[60].mxu0 }
 0x154   :  { %v412_v25 = vadd.f32 %v411_v23, %v1241_v30  ;;  %v413_v26 = vpop.f32.mrb[61].mxu0 }
 0x155   :  { %v414_v27 = vadd.f32 %v413_v26, %v1243_v31  ;;  %734 = vmatprep.mubr.f32.mxu1 %v481_v22 }
 0x156   :  { %735 = vmatmul.mubr.f32.gmra.mrb[44].mxu1 %v480_v24  ;;  %v482_v32 = vmax.f32 %v412_v25, 0.0 }
 0x157   :  { %v483_v28 = vmax.f32 %v414_v27, 0.0  ;;  %v417_v29 = vpop.f32.mrb[62].mxu0 }
 0x158   :  { %v418_v3 = vadd.f32 %v417_v29, %v1241_v30  ;;  %v419_v33 = vpop.f32.mrb[63].mxu0 }
 0x159   :  { %v420_v34 = vadd.f32 %v419_v33, %v1243_v31  ;;  %739 = vmatprep.mubr.f32.mxu1 %v483_v28 }
 0x15a   :  { %740 = vmatmul.mubr.f32.gmra.mrb[46].mxu1 %v482_v32  ;;  %v484_v36 = vmax.f32 %v418_v3, 0.0 }
 0x15b   :  { %v485_v35 = vmax.f32 %v420_v34, 0.0 }
 0x15d   :  { %744 = vmatprep.mubr.f32.mxu1 %v485_v35 }
 0x15e   :  { %745 = vmatmul.mubr.f32.gmra.mrb[48].mxu1 %v484_v36 }
 0x1b5   :  { %v591_v38 = vpop.f32.mrb[64].mxu0 }
 0x1b6   :  { %v592_v39 = vadd.f32 %v1312_v37, %v591_v38  ;;  %v593_v40 = vpop.f32.mrb[65].mxu0 }
 0x1b8   :  { %751 = vst.msk [vmem:[%s1479_s5] sm:$0xff] %vm750_vm1, %v592_v39 }
 0x1b9   :  { %v596_v30 = vpop.f32.mrb[66].mxu0 }
 0x1ba   :  { %v597_v31 = vadd.f32 %v1312_v37, %v596_v30  ;;  %v598_v41 = vpop.f32.mrb[67].mxu0 }
 0x1bc   :  { %752 = vst.msk [vmem:[%s1479_s5 + $0x8] sm:$0xff] %vm750_vm1, %v597_v31 }
 0x1bd   :  { %v601_v42 = vpop.f32.mrb[68].mxu0 }
 0x1be   :  { %v602_v43 = vadd.f32 %v1312_v37, %v601_v42  ;;  %v603_v44 = vpop.f32.mrb[69].mxu0 }
 0x1c0   :  { %753 = vst.msk [vmem:[%s1479_s5 + $0x10] sm:$0xff] %vm750_vm1, %v602_v43 }
 0x1c1   :  { %v606_v45 = vpop.f32.mrb[70].mxu0 }
 0x1c2   :  { %v607_v46 = vadd.f32 %v1312_v37, %v606_v45  ;;  %v608_v47 = vpop.f32.mrb[71].mxu0 }
 0x1c4   :  { %754 = vst.msk [vmem:[%s1479_s5 + $0x18] sm:$0xff] %vm750_vm1, %v607_v46 }
 0x1c5   :  { %v611_v48 = vpop.f32.mrb[72].mxu0 }
 0x1c6   :  { %v612_v49 = vadd.f32 %v1312_v37, %v611_v48  ;;  %v613_v50 = vpop.f32.mrb[73].mxu0 }
 0x1c8   :  { %755 = vst.msk [vmem:[%s1479_s5 + $0x20] sm:$0xff] %vm750_vm1, %v612_v49 }
 0x1c9   :  { %v616_v51 = vpop.f32.mrb[74].mxu0 }
 0x1ca   :  { %v617_v52 = vadd.f32 %v1312_v37, %v616_v51  ;;  %v618_v53 = vpop.f32.mrb[75].mxu0 }
 0x1cc   :  { %756 = vst.msk [vmem:[%s1479_s5 + $0x28] sm:$0xff] %vm750_vm1, %v617_v52 }
 0x1cd   :  { %v621_v54 = vpop.f32.mrb[76].mxu0 }
 0x1ce   :  { %v622_v55 = vadd.f32 %v1312_v37, %v621_v54  ;;  %v623_v56 = vpop.f32.mrb[77].mxu0 }
 0x1d0   :  { %757 = vst.msk [vmem:[%s1479_s5 + $0x30] sm:$0xff] %vm750_vm1, %v622_v55 }
 0x1d1   :  { %v626_v57 = vpop.f32.mrb[0].mxu1 }
 0x1d2   :  { %v627_v58 = vadd.f32 %v1312_v37, %v626_v57  ;;  %v628_v59 = vpop.f32.mrb[1].mxu1 }
 0x1d4   :  { %758 = vst.msk [vmem:[%s1479_s5 + $0x38] sm:$0xff] %vm750_vm1, %v627_v58 }
 0x1d5   :  { %v631_v60 = vpop.f32.mrb[2].mxu1 }
 0x1d6   :  { %v632_v61 = vadd.f32 %v1312_v37, %v631_v60  ;;  %v633_v62 = vpop.f32.mrb[3].mxu1 }
 0x1d8   :  { %759 = vst.msk [vmem:[%s1479_s5 + $0x40] sm:$0xff] %vm750_vm1, %v632_v61 }
 0x1d9   :  { %v636_v63 = vpop.f32.mrb[4].mxu1 }
 0x1da   :  { %v637_v0 = vadd.f32 %v1312_v37, %v636_v63  ;;  %v638_v1 = vpop.f32.mrb[5].mxu1 }
 0x1dc   :  { %760 = vst.msk [vmem:[%s1479_s5 + $0x48] sm:$0xff] %vm750_vm1, %v637_v0 }
 0x1dd   :  { %v641_v2 = vpop.f32.mrb[6].mxu1 }
 0x1de   :  { %v642_v4 = vadd.f32 %v1312_v37, %v641_v2  ;;  %v643_v5 = vpop.f32.mrb[7].mxu1 }
 0x1e0   :  { %761 = vst.msk [vmem:[%s1479_s5 + $0x50] sm:$0xff] %vm750_vm1, %v642_v4 }
 0x1e1   :  { %v646_v6 = vpop.f32.mrb[8].mxu1 }
 0x1e2   :  { %v647_v7 = vadd.f32 %v1312_v37, %v646_v6  ;;  %v648_v9 = vpop.f32.mrb[9].mxu1 }
 0x1e4   :  { %762 = vst.msk [vmem:[%s1479_s5 + $0x58] sm:$0xff] %vm750_vm1, %v647_v7 }
 0x1e5   :  { %v651_v10 = vpop.f32.mrb[10].mxu1 }
 0x1e6   :  { %v652_v11 = vadd.f32 %v1312_v37, %v651_v10  ;;  %v653_v12 = vpop.f32.mrb[11].mxu1 }
 0x1e8   :  { %763 = vst.msk [vmem:[%s1479_s5 + $0x60] sm:$0xff] %vm750_vm1, %v652_v11 }
 0x1e9   :  { %v656_v13 = vpop.f32.mrb[12].mxu1 }
 0x1ea   :  { %v657_v14 = vadd.f32 %v1312_v37, %v656_v13  ;;  %v658_v15 = vpop.f32.mrb[13].mxu1 }
 0x1ec   :  { %764 = vst.msk [vmem:[%s1479_s5 + $0x68] sm:$0xff] %vm750_vm1, %v657_v14 }
 0x1ed   :  { %v661_v16 = vpop.f32.mrb[14].mxu1 }
 0x1ee   :  { %v662_v17 = vadd.f32 %v1312_v37, %v661_v16  ;;  %v663_v18 = vpop.f32.mrb[15].mxu1 }
 0x1f0   :  { %765 = vst.msk [vmem:[%s1479_s5 + $0x70] sm:$0xff] %vm750_vm1, %v662_v17 }
 0x1f1   :  { %v666_v8 = vpop.f32.mrb[16].mxu1 }
 0x1f2   :  { %v667_v19 = vadd.f32 %v1312_v37, %v666_v8  ;;  %v668_v20 = vpop.f32.mrb[17].mxu1 }
 0x1f4   :  { %766 = vst.msk [vmem:[%s1479_s5 + $0x78] sm:$0xff] %vm750_vm1, %v667_v19 }
 0x1f5   :  { %v671_v21 = vpop.f32.mrb[18].mxu1 }
 0x1f6   :  { %v672_v22 = vadd.f32 %v1312_v37, %v671_v21  ;;  %v673_v23 = vpop.f32.mrb[19].mxu1 }
 0x1f8   :  { %767 = vst.msk [vmem:[%s1479_s5 + $0x80] sm:$0xff] %vm750_vm1, %v672_v22 }
 0x1f9   :  { %v676_v24 = vpop.f32.mrb[20].mxu1 }
 0x1fa   :  { %v677_v25 = vadd.f32 %v1312_v37, %v676_v24  ;;  %v678_v26 = vpop.f32.mrb[21].mxu1 }
 0x1fc   :  { %768 = vst.msk [vmem:[%s1479_s5 + $0x88] sm:$0xff] %vm750_vm1, %v677_v25 }
 0x1fd   :  { %v681_v27 = vpop.f32.mrb[22].mxu1 }
 0x1fe   :  { %v682_v28 = vadd.f32 %v1312_v37, %v681_v27  ;;  %v683_v29 = vpop.f32.mrb[23].mxu1 }
 0x200   :  { %769 = vst.msk [vmem:[%s1479_s5 + $0x90] sm:$0xff] %vm750_vm1, %v682_v28 }
 0x201   :  { %v686_v32 = vpop.f32.mrb[24].mxu1 }
 0x202   :  { %v687_v3 = vadd.f32 %v1312_v37, %v686_v32  ;;  %v688_v33 = vpop.f32.mrb[25].mxu1 }
 0x204   :  { %770 = vst.msk [vmem:[%s1479_s5 + $0x98] sm:$0xff] %vm750_vm1, %v687_v3 }
 0x205   :  { %v691_v34 = vpop.f32.mrb[26].mxu1 }
 0x206   :  { %v692_v35 = vadd.f32 %v1312_v37, %v691_v34  ;;  %v693_v36 = vpop.f32.mrb[27].mxu1 }
 0x208   :  { %771 = vst.msk [vmem:[%s1479_s5 + $0xa0] sm:$0xff] %vm750_vm1, %v692_v35 }
 0x209   :  { %v696_v38 = vpop.f32.mrb[28].mxu1 }
 0x20a   :  { %v697_v39 = vadd.f32 %v1312_v37, %v696_v38  ;;  %v698_v40 = vpop.f32.mrb[29].mxu1 }
 0x20c   :  { %772 = vst.msk [vmem:[%s1479_s5 + $0xa8] sm:$0xff] %vm750_vm1, %v697_v39 }
 0x20d   :  { %v701_v30 = vpop.f32.mrb[30].mxu1 }
 0x20e   :  { %v702_v31 = vadd.f32 %v1312_v37, %v701_v30  ;;  %v703_v41 = vpop.f32.mrb[31].mxu1 }
 0x210   :  { %773 = vst.msk [vmem:[%s1479_s5 + $0xb0] sm:$0xff] %vm750_vm1, %v702_v31 }
 0x211   :  { %v706_v42 = vpop.f32.mrb[32].mxu1 }
 0x212   :  { %v707_v43 = vadd.f32 %v1312_v37, %v706_v42  ;;  %v708_v44 = vpop.f32.mrb[33].mxu1 }
 0x214   :  { %774 = vst.msk [vmem:[%s1479_s5 + $0xb8] sm:$0xff] %vm750_vm1, %v707_v43 }
 0x215   :  { %v711_v45 = vpop.f32.mrb[34].mxu1 }
 0x216   :  { %v712_v46 = vadd.f32 %v1312_v37, %v711_v45  ;;  %v713_v47 = vpop.f32.mrb[35].mxu1 }
 0x218   :  { %775 = vst.msk [vmem:[%s1479_s5 + $0xc0] sm:$0xff] %vm750_vm1, %v712_v46 }
 0x219   :  { %v716_v48 = vpop.f32.mrb[36].mxu1 }
 0x21a   :  { %v717_v49 = vadd.f32 %v1312_v37, %v716_v48  ;;  %v718_v50 = vpop.f32.mrb[37].mxu1 }
 0x21c   :  { %776 = vst.msk [vmem:[%s1479_s5 + $0xc8] sm:$0xff] %vm750_vm1, %v717_v49 }
 0x21d   :  { %v721_v51 = vpop.f32.mrb[38].mxu1 }
 0x21e   :  { %v722_v52 = vadd.f32 %v1312_v37, %v721_v51  ;;  %v723_v53 = vpop.f32.mrb[39].mxu1 }
 0x220   :  { %777 = vst.msk [vmem:[%s1479_s5 + $0xd0] sm:$0xff] %vm750_vm1, %v722_v52 }
 0x221   :  { %v726_v54 = vpop.f32.mrb[40].mxu1 }
 0x222   :  { %v727_v55 = vadd.f32 %v1312_v37, %v726_v54  ;;  %v728_v56 = vpop.f32.mrb[41].mxu1 }
 0x224   :  { %778 = vst.msk [vmem:[%s1479_s5 + $0xd8] sm:$0xff] %vm750_vm1, %v727_v55 }
 0x225   :  { %v731_v57 = vpop.f32.mrb[42].mxu1 }
 0x226   :  { %v732_v58 = vadd.f32 %v1312_v37, %v731_v57  ;;  %v733_v59 = vpop.f32.mrb[43].mxu1 }
 0x228   :  { %779 = vst.msk [vmem:[%s1479_s5 + $0xe0] sm:$0xff] %vm750_vm1, %v732_v58 }
 0x229   :  { %v736_v60 = vpop.f32.mrb[44].mxu1 }
 0x22a   :  { %v737_v61 = vadd.f32 %v1312_v37, %v736_v60  ;;  %v738_v62 = vpop.f32.mrb[45].mxu1 }
 0x22c   :  { %780 = vst.msk [vmem:[%s1479_s5 + $0xe8] sm:$0xff] %vm750_vm1, %v737_v61 }
 0x22d   :  { %v741_v63 = vpop.f32.mrb[46].mxu1 }
 0x22e   :  { %v742_v0 = vadd.f32 %v1312_v37, %v741_v63  ;;  %v743_v1 = vpop.f32.mrb[47].mxu1 }
 0x230   :  { %781 = vst.msk [vmem:[%s1479_s5 + $0xf0] sm:$0xff] %vm750_vm1, %v742_v0 }
 0x231   :  { %v746_v2 = vpop.f32.mrb[48].mxu1 }
 0x232   :  { %v747_v4 = vadd.f32 %v1312_v37, %v746_v2  ;;  %v748_v5 = vpop.f32.mrb[49].mxu1 }
 0x234   :  { %782 = vst.msk [vmem:[%s1479_s5 + $0xf8] sm:$0xff] %vm750_vm1, %v747_v4 }

</bundles_post_ra>
